<compile_context>
chip_gen: v5e
topology: v5e:2x2
jax: 0.10.0
libtpu: 0.0.40
codegen_flags: <defaults>
</compile_context>

<pallas_src>
import jax
import jax.numpy as jnp
from jax.experimental import pallas as pl
from jax.experimental.pallas import tpu as pltpu

DATA_DIM = 24
H1 = 16
H2 = 8
BN_EPS = 1e-5


def _ae_kernel(alpha_ref,                      # (3,) f32 in SMEM (scalar prefetch)
               x_ref,                          # (24, tile) f32
               w1_ref, b1_ref,                 # (16, 24), (16, 1)
               w2_ref, b2_ref,                 # ( 8, 16), ( 8, 1)
               w3_ref, b3_ref,                 # (16,  8), (16, 1)
               w4_ref, b4_ref,                 # (24, 16), (24, 1)
               out_ref):                       # (24, tile) f32
    """Full eval-mode autoencoder forward for one (features, batch_tile) slab."""

    def layer(h, w_ref, b_ref, alpha):
        # Linear (+ folded BatchNorm):  y = W' @ h + b'   on the MXU.
        y = jnp.dot(w_ref[...], h, preferred_element_type=jnp.float32) + b_ref[...]
        # PReLU with a single shared alpha (scalar from SMEM).
        return jnp.where(y >= 0.0, y, alpha * y)

    h = x_ref[...]                                       # (24, tile)
    h = layer(h, w1_ref, b1_ref, alpha_ref[0])           # (16, tile)
    # TODO(synk): Dropout(p=0.1) is identity in eval mode; no stochastic mask here.
    h = layer(h, w2_ref, b2_ref, alpha_ref[1])           # ( 8, tile)  encoded
    h = layer(h, w3_ref, b3_ref, alpha_ref[2])           # (16, tile)
    y = jnp.dot(w4_ref[...], h, preferred_element_type=jnp.float32) + b4_ref[...]
    out_ref[...] = y                                     # (24, tile)


def _round_up(n, m):
    return ((n + m - 1) // m) * m


def autoencoder_forward(x, kparams, *, batch_tile=1024):
    """x: (B, DATA_DIM) float32.  kparams: folded / kernel-layout params."""
    B, D = x.shape
    assert D == DATA_DIM

    # Lane-dense batch tile: multiple of 128, no larger than the padded batch.
    tile = max(128, (batch_tile // 128) * 128)
    tile = min(tile, _round_up(B, 128))
    padded_B = _round_up(B, tile)
    grid = (padded_B // tile,)

    # (features, batch) slab, zero-padded along batch.
    x_t = jnp.zeros((DATA_DIM, padded_B), jnp.float32).at[:, :B].set(x.T)

    weights = [kparams[k] for k in
               ("w1", "b1", "w2", "b2", "w3", "b3", "w4", "b4")]

    def full_spec(arr):
        nd = arr.ndim
        # Full-array block, constant index -> DMA'd once, reused every tile.
        return pl.BlockSpec(arr.shape, lambda i, *_, _nd=nd: (0,) * _nd)

    in_specs = [pl.BlockSpec((DATA_DIM, tile), lambda i, *_: (0, i))]
    in_specs += [full_spec(w) for w in weights]
    out_spec = pl.BlockSpec((DATA_DIM, tile), lambda i, *_: (0, i))

    out_t = pl.pallas_call(
        _ae_kernel,
        out_shape=jax.ShapeDtypeStruct((DATA_DIM, padded_B), jnp.float32),
        grid_spec=pltpu.PrefetchScalarGridSpec(
            num_scalar_prefetch=1,              # alphas -> SMEM
            grid=grid,
            in_specs=in_specs,
            out_specs=out_spec,
        ),
        compiler_params=pltpu.CompilerParams(
            dimension_semantics=("parallel",),
        ),
    )(kparams["alphas"], x_t, *weights)

    return out_t[:, :B].T


# ----------------------- parameter construction / glue -----------------------

def make_params(key):
    """Raw PyTorch-shaped parameters: Linear W (out,in), b (out,);
    BatchNorm gamma/beta/running_mean/running_var (dim,); PReLU scalar alpha."""
    ks = jax.random.split(key, 20)

    def linear(kw, kb, fan_in, fan_out):
        bound = 1.0 / jnp.sqrt(fan_in)
        w = jax.random.uniform(kw, (fan_out, fan_in), jnp.float32, -bound, bound)
        b = jax.random.uniform(kb, (fan_out,), jnp.float32, -bound, bound)
        return w, b

    def bn(kg, kb, km, kv, dim):
        gamma = jax.random.uniform(kg, (dim,), jnp.float32, 0.5, 1.5)
        beta = 0.1 * jax.random.normal(kb, (dim,), jnp.float32)
        mean = 0.1 * jax.random.normal(km, (dim,), jnp.float32)
        var = jax.random.uniform(kv, (dim,), jnp.float32, 0.5, 1.5)
        return gamma, beta, mean, var

    w1, b1 = linear(ks[0], ks[1], DATA_DIM, H1)
    w2, b2 = linear(ks[2], ks[3], H1, H2)
    w3, b3 = linear(ks[4], ks[5], H2, H1)
    w4, b4 = linear(ks[6], ks[7], H1, DATA_DIM)
    g1, be1, m1, v1 = bn(ks[8], ks[9], ks[10], ks[11], H1)
    g2, be2, m2, v2 = bn(ks[12], ks[13], ks[14], ks[15], H2)
    g3, be3, m3, v3 = bn(ks[16], ks[17], ks[18], ks[19], H1)

    return dict(
        w1=w1, b1=b1, g1=g1, be1=be1, m1=m1, v1=v1, a1=jnp.float32(0.25),
        w2=w2, b2=b2, g2=g2, be2=be2, m2=m2, v2=v2, a2=jnp.float32(0.10),
        w3=w3, b3=b3, g3=g3, be3=be3, m3=m3, v3=v3, a3=jnp.float32(0.30),
        w4=w4, b4=b4,
    )


def fold_params(p):
    """Fold eval-mode BatchNorm into the Linear weights/bias and pack for the
    (features, batch) kernel layout.
    y = W x + b ; z = s*y + t  ->  (s*W) x + (s*b + t)."""
    def fold(w, b, gamma, beta, mean, var):
        s = gamma / jnp.sqrt(var + BN_EPS)
        t = beta - mean * s
        return w * s[:, None], (b * s + t).reshape(-1, 1)

    w1, b1 = fold(p["w1"], p["b1"], p["g1"], p["be1"], p["m1"], p["v1"])
    w2, b2 = fold(p["w2"], p["b2"], p["g2"], p["be2"], p["m2"], p["v2"])
    w3, b3 = fold(p["w3"], p["b3"], p["g3"], p["be3"], p["m3"], p["v3"])
    w4, b4 = p["w4"], p["b4"].reshape(-1, 1)
    alphas = jnp.stack([p["a1"], p["a2"], p["a3"]])
    return dict(w1=w1, b1=b1, w2=w2, b2=b2, w3=w3, b3=b3, w4=w4, b4=b4,
                alphas=alphas)


def reference_forward(x, p):
    """Pure-JAX eval-mode reference using the raw (unfolded) parameters."""
    def lin(h, w, b):
        return h @ w.T + b

    def bn(h, gamma, beta, mean, var):
        return (h - mean) / jnp.sqrt(var + BN_EPS) * gamma + beta

    def prelu(h, a):
        return jnp.where(h >= 0.0, h, a * h)

    h = prelu(bn(lin(x, p["w1"], p["b1"]), p["g1"], p["be1"], p["m1"], p["v1"]), p["a1"])
    h = prelu(bn(lin(h, p["w2"], p["b2"]), p["g2"], p["be2"], p["m2"], p["v2"]), p["a2"])
    h = prelu(bn(lin(h, p["w3"], p["b3"]), p["g3"], p["be3"], p["m3"], p["v3"]), p["a3"])
    return lin(h, p["w4"], p["b4"])


if __name__ == "__main__":
    key = jax.random.PRNGKey(0)
    k_x, k_x2, k_p = jax.random.split(key, 3)

    raw_params = make_params(k_p)
    kernel_params = fold_params(raw_params)

    # Small, non-multiple-of-128 batch -> exercises the padding path (grid=1).
    B = 16
    x = jax.random.normal(k_x, (B, DATA_DIM), jnp.float32)
    out = jax.block_until_ready(autoencoder_forward(x, kernel_params, batch_tile=1024))
    ref = reference_forward(x, raw_params)
    assert out.shape == (B, DATA_DIM)
    assert jnp.allclose(out, ref, atol=1e-4, rtol=1e-4), "mismatch vs JAX reference (B=16)"

    # Ragged, multi-tile batch -> exercises grid > 1 with lane-dense tiles.
    B2 = 200
    x2 = jax.random.normal(k_x2, (B2, DATA_DIM), jnp.float32)
    out2 = jax.block_until_ready(autoencoder_forward(x2, kernel_params, batch_tile=128))
    ref2 = reference_forward(x2, raw_params)
    assert out2.shape == (B2, DATA_DIM)
    assert jnp.allclose(out2, ref2, atol=1e-4, rtol=1e-4), "mismatch vs JAX reference (B=200)"

    print("KERNEL_OK")
</pallas_src>

<mosaic_0001>
module attributes {stable_mosaic.version = 11 : i64} {
  func.func @_ae_kernel(%arg0: i32, %arg1: memref<3xf32, #tpu.memory_space<smem>>, %arg2: memref<24x128xf32, #tpu.memory_space<vmem>>, %arg3: memref<16x24xf32, #tpu.memory_space<vmem>>, %arg4: memref<16x1xf32, #tpu.memory_space<vmem>>, %arg5: memref<8x16xf32, #tpu.memory_space<vmem>>, %arg6: memref<8x1xf32, #tpu.memory_space<vmem>>, %arg7: memref<16x8xf32, #tpu.memory_space<vmem>>, %arg8: memref<16x1xf32, #tpu.memory_space<vmem>>, %arg9: memref<24x16xf32, #tpu.memory_space<vmem>>, %arg10: memref<24x1xf32, #tpu.memory_space<vmem>>, %arg11: memref<24x128xf32, #tpu.memory_space<vmem>>) attributes {dimension_semantics = [#tpu.dimension_semantics<parallel>], iteration_bounds = array<i64: 1>, scalar_prefetch = 1 : i64, scratch_operands = 0 : i64, tpu.core_type = #tpu.core_type<tc>, window_params = [{transform_indices = @transform_0, window_bounds = array<i64: 24, 128>}, {pipeline_mode = #tpu.pipeline_mode<synchronous>, transform_indices = @transform_1, window_bounds = array<i64: 16, 24>}, {pipeline_mode = #tpu.pipeline_mode<synchronous>, transform_indices = @transform_2, window_bounds = array<i64: 16, 1>}, {pipeline_mode = #tpu.pipeline_mode<synchronous>, transform_indices = @transform_3, window_bounds = array<i64: 8, 16>}, {pipeline_mode = #tpu.pipeline_mode<synchronous>, transform_indices = @transform_4, window_bounds = array<i64: 8, 1>}, {pipeline_mode = #tpu.pipeline_mode<synchronous>, transform_indices = @transform_5, window_bounds = array<i64: 16, 8>}, {pipeline_mode = #tpu.pipeline_mode<synchronous>, transform_indices = @transform_6, window_bounds = array<i64: 16, 1>}, {pipeline_mode = #tpu.pipeline_mode<synchronous>, transform_indices = @transform_7, window_bounds = array<i64: 24, 16>}, {pipeline_mode = #tpu.pipeline_mode<synchronous>, transform_indices = @transform_8, window_bounds = array<i64: 24, 1>}, {transform_indices = @transform_9, window_bounds = array<i64: 24, 128>}]} {
    %c0 = arith.constant 0 : index
    %c0_0 = arith.constant 0 : index
    %0 = vector.load %arg2[%c0, %c0_0] : memref<24x128xf32, #tpu.memory_space<vmem>>, vector<24x128xf32>
    %c0_1 = arith.constant 0 : index
    %1 = memref.load %arg1[%c0_1] : memref<3xf32, #tpu.memory_space<smem>>
    %c0_2 = arith.constant 0 : index
    %c0_3 = arith.constant 0 : index
    %2 = vector.load %arg3[%c0_2, %c0_3] : memref<16x24xf32, #tpu.memory_space<vmem>>, vector<16x24xf32>
    %cst = arith.constant dense<0.000000e+00> : vector<16x128xf32>
    %3 = tpu.matmul %2, %0, %cst {dimension_numbers = #tpu.dot_dimension_numbers<[1], [0], [0], [1], [0, 0, 1, 1], [], []>} : vector<16x24xf32>, vector<24x128xf32>, vector<16x128xf32> -> vector<16x128xf32>
    %c0_4 = arith.constant 0 : index
    %c0_5 = arith.constant 0 : index
    %4 = vector.load %arg4[%c0_4, %c0_5] : memref<16x1xf32, #tpu.memory_space<vmem>>, vector<16x1xf32>
    %5 = vector.broadcast %4 : vector<16x1xf32> to vector<16x128xf32>
    %6 = arith.addf %3, %5 : vector<16x128xf32>
    %cst_6 = arith.constant 0.000000e+00 : f32
    %7 = vector.broadcast %cst_6 : f32 to vector<16x128xf32>
    %8 = arith.cmpf oge, %6, %7 : vector<16x128xf32>
    %9 = vector.broadcast %1 : f32 to vector<16x128xf32>
    %10 = arith.mulf %9, %6 : vector<16x128xf32>
    %11 = arith.select %8, %6, %10 : vector<16x128xi1>, vector<16x128xf32>
    %c1 = arith.constant 1 : index
    %12 = memref.load %arg1[%c1] : memref<3xf32, #tpu.memory_space<smem>>
    %c0_7 = arith.constant 0 : index
    %c0_8 = arith.constant 0 : index
    %13 = vector.load %arg5[%c0_7, %c0_8] : memref<8x16xf32, #tpu.memory_space<vmem>>, vector<8x16xf32>
    %cst_9 = arith.constant dense<0.000000e+00> : vector<8x128xf32>
    %14 = tpu.matmul %13, %11, %cst_9 {dimension_numbers = #tpu.dot_dimension_numbers<[1], [0], [0], [1], [0, 0, 1, 1], [], []>} : vector<8x16xf32>, vector<16x128xf32>, vector<8x128xf32> -> vector<8x128xf32>
    %c0_10 = arith.constant 0 : index
    %c0_11 = arith.constant 0 : index
    %15 = vector.load %arg6[%c0_10, %c0_11] : memref<8x1xf32, #tpu.memory_space<vmem>>, vector<8x1xf32>
    %16 = vector.broadcast %15 : vector<8x1xf32> to vector<8x128xf32>
    %17 = arith.addf %14, %16 : vector<8x128xf32>
    %cst_12 = arith.constant 0.000000e+00 : f32
    %18 = vector.broadcast %cst_12 : f32 to vector<8x128xf32>
    %19 = arith.cmpf oge, %17, %18 : vector<8x128xf32>
    %20 = vector.broadcast %12 : f32 to vector<8x128xf32>
    %21 = arith.mulf %20, %17 : vector<8x128xf32>
    %22 = arith.select %19, %17, %21 : vector<8x128xi1>, vector<8x128xf32>
    %c2 = arith.constant 2 : index
    %23 = memref.load %arg1[%c2] : memref<3xf32, #tpu.memory_space<smem>>
    %c0_13 = arith.constant 0 : index
    %c0_14 = arith.constant 0 : index
    %24 = vector.load %arg7[%c0_13, %c0_14] : memref<16x8xf32, #tpu.memory_space<vmem>>, vector<16x8xf32>
    %cst_15 = arith.constant dense<0.000000e+00> : vector<16x128xf32>
    %25 = tpu.matmul %24, %22, %cst_15 {dimension_numbers = #tpu.dot_dimension_numbers<[1], [0], [0], [1], [0, 0, 1, 1], [], []>} : vector<16x8xf32>, vector<8x128xf32>, vector<16x128xf32> -> vector<16x128xf32>
    %c0_16 = arith.constant 0 : index
    %c0_17 = arith.constant 0 : index
    %26 = vector.load %arg8[%c0_16, %c0_17] : memref<16x1xf32, #tpu.memory_space<vmem>>, vector<16x1xf32>
    %27 = vector.broadcast %26 : vector<16x1xf32> to vector<16x128xf32>
    %28 = arith.addf %25, %27 : vector<16x128xf32>
    %cst_18 = arith.constant 0.000000e+00 : f32
    %29 = vector.broadcast %cst_18 : f32 to vector<16x128xf32>
    %30 = arith.cmpf oge, %28, %29 : vector<16x128xf32>
    %31 = vector.broadcast %23 : f32 to vector<16x128xf32>
    %32 = arith.mulf %31, %28 : vector<16x128xf32>
    %33 = arith.select %30, %28, %32 : vector<16x128xi1>, vector<16x128xf32>
    %c0_19 = arith.constant 0 : index
    %c0_20 = arith.constant 0 : index
    %34 = vector.load %arg9[%c0_19, %c0_20] : memref<24x16xf32, #tpu.memory_space<vmem>>, vector<24x16xf32>
    %cst_21 = arith.constant dense<0.000000e+00> : vector<24x128xf32>
    %35 = tpu.matmul %34, %33, %cst_21 {dimension_numbers = #tpu.dot_dimension_numbers<[1], [0], [0], [1], [0, 0, 1, 1], [], []>} : vector<24x16xf32>, vector<16x128xf32>, vector<24x128xf32> -> vector<24x128xf32>
    %c0_22 = arith.constant 0 : index
    %c0_23 = arith.constant 0 : index
    %36 = vector.load %arg10[%c0_22, %c0_23] : memref<24x1xf32, #tpu.memory_space<vmem>>, vector<24x1xf32>
    %37 = vector.broadcast %36 : vector<24x1xf32> to vector<24x128xf32>
    %38 = arith.addf %35, %37 : vector<24x128xf32>
    %c0_24 = arith.constant 0 : index
    %c0_25 = arith.constant 0 : index
    %39 = vector.load %arg11[%c0_24, %c0_25] : memref<24x128xf32, #tpu.memory_space<vmem>>, vector<24x128xf32>
    tpu.vector_store %arg11[%c0_24, %c0_25], %38 {strides = array<i32>} : memref<24x128xf32, #tpu.memory_space<vmem>>, vector<24x128xf32>,
    return
  }
  func.func @transform_0(%arg0: i32, %arg1: memref<3xf32, #tpu.memory_space<smem>>) -> (i32, i32) {
    %c0_i32 = arith.constant 0 : i32
    %c0_i32_0 = arith.constant 0 : i32
    return %c0_i32, %arg0 : i32, i32
  }
  func.func @transform_1(%arg0: i32, %arg1: memref<3xf32, #tpu.memory_space<smem>>) -> (i32, i32) {
    %c0_i32 = arith.constant 0 : i32
    %c0_i32_0 = arith.constant 0 : i32
    %c0_i32_1 = arith.constant 0 : i32
    return %c0_i32, %c0_i32_0 : i32, i32
  }
  func.func @transform_2(%arg0: i32, %arg1: memref<3xf32, #tpu.memory_space<smem>>) -> (i32, i32) {
    %c0_i32 = arith.constant 0 : i32
    %c0_i32_0 = arith.constant 0 : i32
    %c0_i32_1 = arith.constant 0 : i32
    return %c0_i32, %c0_i32_0 : i32, i32
  }
  func.func @transform_3(%arg0: i32, %arg1: memref<3xf32, #tpu.memory_space<smem>>) -> (i32, i32) {
    %c0_i32 = arith.constant 0 : i32
    %c0_i32_0 = arith.constant 0 : i32
    %c0_i32_1 = arith.constant 0 : i32
    return %c0_i32, %c0_i32_0 : i32, i32
  }
  func.func @transform_4(%arg0: i32, %arg1: memref<3xf32, #tpu.memory_space<smem>>) -> (i32, i32) {
    %c0_i32 = arith.constant 0 : i32
    %c0_i32_0 = arith.constant 0 : i32
    %c0_i32_1 = arith.constant 0 : i32
    return %c0_i32, %c0_i32_0 : i32, i32
  }
  func.func @transform_5(%arg0: i32, %arg1: memref<3xf32, #tpu.memory_space<smem>>) -> (i32, i32) {
    %c0_i32 = arith.constant 0 : i32
    %c0_i32_0 = arith.constant 0 : i32
    %c0_i32_1 = arith.constant 0 : i32
    return %c0_i32, %c0_i32_0 : i32, i32
  }
  func.func @transform_6(%arg0: i32, %arg1: memref<3xf32, #tpu.memory_space<smem>>) -> (i32, i32) {
    %c0_i32 = arith.constant 0 : i32
    %c0_i32_0 = arith.constant 0 : i32
    %c0_i32_1 = arith.constant 0 : i32
    return %c0_i32, %c0_i32_0 : i32, i32
  }
  func.func @transform_7(%arg0: i32, %arg1: memref<3xf32, #tpu.memory_space<smem>>) -> (i32, i32) {
    %c0_i32 = arith.constant 0 : i32
    %c0_i32_0 = arith.constant 0 : i32
    %c0_i32_1 = arith.constant 0 : i32
    return %c0_i32, %c0_i32_0 : i32, i32
  }
  func.func @transform_8(%arg0: i32, %arg1: memref<3xf32, #tpu.memory_space<smem>>) -> (i32, i32) {
    %c0_i32 = arith.constant 0 : i32
    %c0_i32_0 = arith.constant 0 : i32
    %c0_i32_1 = arith.constant 0 : i32
    return %c0_i32, %c0_i32_0 : i32, i32
  }
  func.func @transform_9(%arg0: i32, %arg1: memref<3xf32, #tpu.memory_space<smem>>) -> (i32, i32) {
    %c0_i32 = arith.constant 0 : i32
    %c0_i32_0 = arith.constant 0 : i32
    return %c0_i32, %arg0 : i32, i32
  }
}

</mosaic_0001>

<bundles_post_ra>
// kernel: tpu_custom_call.1
= control target key start
LH: loop header
LB: loop body
LE: loop exit
PB: predicated region body
PF: predicated region fallthrough
CT: control target
= control target key end

     0   :  { %s322_s16 = smov [#allocation3]   ;;  %s449_s0 = inlined_call_operand.vmem [shape: f32[3], index: 0, kind: input, shape index: {}]   ;;  %s450_s1 = inlined_call_operand.vmem [shape: f32[24,128], index: 1, kind: input, shape index: {}]   ;;  %s451_s2 = inlined_call_operand.vmem [shape: f32[16,24], index: 2, kind: input, shape index: {}]   ;;  %s452_s3 = inlined_call_operand.vmem [shape: f32[16,1], index: 3, kind: input, shape index: {}]   ;;  %s453_s4 = inlined_call_operand.vmem [shape: f32[8,16], index: 4, kind: input, shape index: {}]   ;;  %s454_s5 = inlined_call_operand.vmem [shape: f32[8,1], index: 5, kind: input, shape index: {}]   ;;  %s455_s6 = inlined_call_operand.vmem [shape: f32[16,8], index: 6, kind: input, shape index: {}]   ;;  %s456_s7 = inlined_call_operand.vmem [shape: f32[16,1], index: 7, kind: input, shape index: {}]   ;;  %s457_s8 = inlined_call_operand.vmem [shape: f32[24,16], index: 8, kind: input, shape index: {}]   ;;  %s458_s9 = inlined_call_operand.vmem [shape: f32[24,1], index: 9, kind: input, shape index: {}]   ;;  %s459_s10 = inlined_call_operand.hbm [shape: f32[24,128], index: 10, kind: output, shape index: {}]  }
   0x1   :  { %s16_s15 = sshll.u32 %s449_s0, 4  ;;  %s17_s15 = int_to_ptr.vmem [resolvable:$true] %s16_s15 }
   0x2   :  { %19 = dma.vmem_to_smem %s17_s15, 16, %s322_s16, [#allocation2] }
   0x3   :  { %318 = dma.done.wait [#allocation2], 16 }
   0x4   :  { %319 = vsyncadd [#allocation2], 4294967280 }
   0x5   :  { %22 = sfence }
   0x6   :  { %v44_v0 = vld [vmem:[%s450_s1 + $0x10] sm:$0xff]  ;;  %v49_v1 = vld [vmem:[%s452_s3 + $0x8] sm:$0xff]  ;;  %v323_v3 = vmov 0   ;;  %v42_v4 = vld [vmem:[%s450_s1] sm:$0xff] }
   0x7   :  { %v43_v2 = vld [vmem:[%s450_s1 + $0x8] sm:$0xff]  ;;  %80 = vmatpush.msra.mxu0 %v44_v0  ;;  %279 = vset.pattern.permute.xlu0 %v323_v3 }
   0x8   :  { %57 = vperm.xlu0 %279, %v49_v1   ;;  %280 = vset.pattern.permute.xlu1 %v323_v3 }
   0x9   :  { %23 = vsyncpa [#allocation5], 0  ;;  %81 = vmatpush.msra.mxu0 %v43_v2  ;;  %v46_v5 = vld [vmem:[%s451_s2] sm:$0xff]  ;;  %vm60_vm0 = vcmask 195584   ;;  %281 = vset.pattern.permute.xlu2 %v323_v3  ;;  %v47_v7 = vld [vmem:[%s451_s2 + $0x8] sm:$0xff]  ;;  %s45_s2 = sld [smem:[#allocation3]] }
   0xa   :  { %v48_v6 = vld [vmem:[%s452_s3] sm:$0xff]  ;;  %v189_v8 = vld [vmem:[%s458_s9 + $0x8] sm:$0xff]  ;;  %v190_v11 = vld [vmem:[%s458_s9 + $0x10] sm:$0xff]  ;;  %vm105_vm3 = vcmask 130048   ;;  %s264_s21 = sld [smem:[#allocation3 + $0x1]]  ;;  %vm148_vm5 = vcmask 64512  }
   0xb   :  { %82 = vmatpush.msra.mxu0 %v42_v4  ;;  %v99_v9 = vld [vmem:[%s454_s5] sm:$0xff]  ;;  %v137_v10 = vld [vmem:[%s456_s7 + $0x8] sm:$0xff]  ;;  %v187_v47 = vld [vmem:[%s457_s8 + $0x10] sm:$0xff]  ;;  %s324_s28 = smov [#allocation4]   ;;  %s250_s11 = sshll.u32 %s459_s10, 4  ;;  %s251_s11 = int_to_ptr.hbm [resolvable:$true] %s250_s11 }
   0xc   :  { %262 = vmatmul.msk.f32.vlgmr.msra.gmra.mxu0 %vm60_vm0, %v46_v5  ;;  %102 = vperm.xlu1 %280, %v99_v9   ;;  %v98_v22 = vld [vmem:[%s453_s4] sm:$0xff]  ;;  %v135_v33 = vld [vmem:[%s455_s6 + $0x8] sm:$0xff]  ;;  %s248_s29 = sshll.u32 %s324_s28, 4  ;;  %s326_s12 = smov 8   ;;  %s249_s29 = int_to_ptr.vmem [resolvable:$true] %s248_s29 }
   0xd   :  { %v136_v24 = vld [vmem:[%s456_s7] sm:$0xff]  ;;  %v186_v45 = vld [vmem:[%s457_s8 + $0x8] sm:$0xff] }
   0xe   :  { %140 = vperm.xlu2 %281, %v136_v24   ;;  %v188_v25 = vld [vmem:[%s458_s9] sm:$0xff]  ;;  %s266_s9 = sld [smem:[#allocation3 + $0x2]] }
   0xf   :  { %v92_v17 = vstv %s45_s2  ;;  %v134_v31 = vld [vmem:[%s455_s6] sm:$0xff] }
  0x10   :  { %52 = vperm.xlu0 %279, %v48_v6   ;;  %v130_v28 = vstv %s264_s21  ;;  %v185_v44 = vld [vmem:[%s457_s8] sm:$0xff]  ;;  %s325_s8 = smov 128  }
  0x14   :  { %263 = vmatmul.msk.f32.gmra.mxu0 %vm60_vm0, %v47_v7  ;;  %145 = vperm.xlu1 %280, %v137_v10   ;;  %v180_v39 = vstv %s266_s9 }
  0x16   :  { %193 = vperm.xlu2 %281, %v188_v25  }
  0x18   :  { %198 = vperm.xlu0 %279, %v189_v8  }
  0x1c   :  { %203 = vperm.xlu1 %280, %v190_v11  }
  0x68   :  { %v141_v35 = vpop.permute.xlu2 %140 }
  0x70   :  { %v194_v48 = vpop.permute.xlu2 %193 }
  0x7a   :  { %v58_v12 = vpop.permute.xlu0 %57 }
  0x7e   :  { %v103_v26 = vpop.permute.xlu1 %102 }
  0x82   :  { %v53_v14 = vpop.permute.xlu0 %52 }
  0x86   :  { %v146_v37 = vpop.permute.xlu1 %145 }
  0x89   :  { %v84_v13 = vpop.f32.mrf.mxu0 }
  0x8a   :  { %v85_v15 = vadd.f32 %v84_v13, %v53_v14  ;;  %v199_v51 = vpop.permute.xlu0 %198 }
  0x8c   :  { %v93_v20 = vmul.f32 %v92_v17, %v85_v15  ;;  %vm90_vm2 = vcmp.ge.f32.partialorder %v85_v15, 0.0 }
  0x8e   :  { %v95_v23 = vsel %vm90_vm2, %v85_v15, %v93_v20  ;;  %v204_v54 = vpop.permute.xlu1 %203 }
  0x91   :  { %v87_v16 = vpop.f32.mrf.mxu0 }
  0x92   :  { %v88_v18 = vadd.f32 %v87_v16, %v58_v12 }
  0x94   :  { %vm91_vm1 = vcmp.ge.f32.partialorder %v88_v18, 0.0  ;;  %v94_v19 = vmul.f32 %v92_v17, %v88_v18 }
  0x96   :  { %v96_v21 = vsel %vm91_vm1, %v88_v18, %v94_v19 }
  0x97   :  { %123 = vmatpush.msra.mxu1 %v96_v21 }
  0x99   :  { %124 = vmatpush.msra.mxu1 %v95_v23 }
  0x9a   :  { %265 = vmatmul.msk.f32.vlgmr.msra.gmra.mxu1 %vm105_vm3, %v98_v22 }
 0x117   :  { %v126_v27 = vpop.f32.mrf.mxu1 }
 0x118   :  { %v127_v29 = vadd.f32 %v126_v27, %v103_v26 }
 0x11a   :  { %vm129_vm4 = vcmp.ge.f32.partialorder %v127_v29, 0.0  ;;  %v131_v30 = vmul.f32 %v130_v28, %v127_v29 }
 0x11c   :  { %v132_v32 = vsel %vm129_vm4, %v127_v29, %v131_v30 }
 0x11d   :  { %170 = vmatpush.msra.mxu2 %v132_v32 }
 0x11e   :  { %267 = vmatmul.msk.f32.vlgmr.msra.gmra.mxu2 %vm148_vm5, %v134_v31 }
 0x126   :  { %268 = vmatmul.msk.f32.gmra.mxu2 %vm148_vm5, %v135_v33 }
 0x1a1   :  { %v172_v34 = vpop.f32.mrf.mxu2 }
 0x1a2   :  { %v173_v36 = vadd.f32 %v172_v34, %v141_v35 }
 0x1a4   :  { %v181_v42 = vmul.f32 %v180_v39, %v173_v36  ;;  %vm178_vm7 = vcmp.ge.f32.partialorder %v173_v36, 0.0 }
 0x1a6   :  { %v183_v46 = vsel %vm178_vm7, %v173_v36, %v181_v42 }
 0x1a9   :  { %v175_v38 = vpop.f32.mrf.mxu2 }
 0x1aa   :  { %v176_v40 = vadd.f32 %v175_v38, %v146_v37 }
 0x1ac   :  { %vm179_vm6 = vcmp.ge.f32.partialorder %v176_v40, 0.0  ;;  %v182_v41 = vmul.f32 %v180_v39, %v176_v40 }
 0x1ae   :  { %v184_v43 = vsel %vm179_vm6, %v176_v40, %v182_v41 }
 0x1af   :  { %229 = vmatpush.msrb.mxu1 %v184_v43  ;;  %272 = vmatpush.msra.mxu3 %v184_v43 }
 0x1b1   :  { %230 = vmatpush.msrb.mxu1 %v183_v46  ;;  %273 = vmatpush.msra.mxu3 %v183_v46 }
 0x1b2   :  { %269 = vmatmul.msk.f32.vlgmr.msrb.gmra.mxu1 %vm105_vm3, %v185_v44  ;;  %270 = vmatmul.msk.f32.vlgmr.msra.gmra.mxu3 %vm105_vm3, %v186_v45 }
 0x1ba   :  { %271 = vmatmul.msk.f32.gmra.mxu3 %vm105_vm3, %v187_v47 }
 0x22f   :  { %v232_v49 = vpop.f32.mrf.mxu1 }
 0x230   :  { %v233_v50 = vadd.f32 %v232_v49, %v194_v48 }
 0x232   :  { %241 = vst [vmem:[#allocation4] sm:$0xff] %v233_v50 }
 0x235   :  { %v235_v52 = vpop.f32.mrf.mxu3 }
 0x236   :  { %v236_v53 = vadd.f32 %v235_v52, %v199_v51 }
 0x238   :  { %242 = vst [vmem:[#allocation4 + $0x8] sm:$0xff] %v236_v53 }
 0x23d   :  { %v238_v55 = vpop.f32.mrf.mxu3 }
 0x23e   :  { %v239_v56 = vadd.f32 %v238_v55, %v204_v54 }
 0x240   :  { %243 = vst [vmem:[#allocation4 + $0x10] sm:$0xff] %v239_v56 }
 0x241   :  { %256 = dma.vmem_to_hbm [thread:$0]  %s249_s29, 384, %s251_s11, [#allocation5], %s325_s8, %s325_s8, %s326_s12  }
 0x242   :  { %320 = dma.done.wait [#allocation5], 384  }
 0x243   :  { %321 = vsyncadd [#allocation5], 4294966912 }
 0x244   :  { %261 = vsyncpa [#allocation5], 1 }

</bundles_post_ra>
